<compile_context>
chip_gen: v5e
topology: v5e:2x2
jax: 0.10.0
libtpu: 0.0.40
codegen_flags: <defaults>
</compile_context>

<pallas_src>
import jax
import jax.numpy as jnp
from jax import lax
from jax.experimental import pallas as pl
from jax.experimental.pallas import tpu as pltpu

CONVERSION_FACTOR = 0.00265441729 * 6.24150934e+18 * 1e-09
LANES = 128


def _partial_sums_kernel(inp_ref, outp_ref, out_ref, abs_acc, sq_acc):
    # inp_ref / outp_ref: (TILE_ROWS, 128) block of the flattened inputs.
    # out_ref: (1, 8, 128) per-split slab; sublane 0 = lane sums of |a-b|,
    #          sublane 1 = lane sums of (a*a - b*b).
    t = pl.program_id(1)

    @pl.when(t == 0)
    def _():
        abs_acc[...] = jnp.zeros_like(abs_acc)
        sq_acc[...] = jnp.zeros_like(sq_acc)

    a = inp_ref[...].astype(jnp.float32)
    b = outp_ref[...].astype(jnp.float32)
    abs_acc[...] += jnp.abs(a - b)
    sq_acc[...] += a * a - b * b

    @pl.when(t == pl.num_programs(1) - 1)
    def _():
        abs_lanes = jnp.sum(abs_acc[...], axis=0, keepdims=True)  # (1, 128)
        sq_lanes = jnp.sum(sq_acc[...], axis=0, keepdims=True)    # (1, 128)
        sub = lax.broadcasted_iota(jnp.int32, (8, LANES), 0)
        slab = jnp.where(sub == 0, abs_lanes,
                         jnp.where(sub == 1, sq_lanes, 0.0))
        out_ref[0] = slab


def _pad_and_reshape(x, padded_rows):
    flat = x.reshape(-1)
    pad = padded_rows * LANES - flat.shape[0]
    if pad:
        # Zero padding is exact: |0-0| = 0 and 0^2 - 0^2 = 0.
        flat = jnp.pad(flat, (0, pad))
    return flat.reshape(padded_rows, LANES)


def _partial_sums(inp, outp):
    n_elems = inp.size
    rows = -(-n_elems // LANES)
    rows = ((rows + 7) // 8) * 8                    # sublane multiple
    tile_rows = min(1024, rows)                     # ~512 KiB/block max (f32)
    tiles_total = -(-rows // tile_rows)
    num_splits = 2 if tiles_total >= 2 else 1       # feeds both TCs on v7x
    tiles_per_split = -(-tiles_total // num_splits)
    padded_rows = num_splits * tiles_per_split * tile_rows

    inp2d = _pad_and_reshape(inp, padded_rows)
    outp2d = _pad_and_reshape(outp, padded_rows)

    in_spec = pl.BlockSpec(
        (tile_rows, LANES),
        lambda c, t: (c * tiles_per_split + t, 0),
    )
    out_spec = pl.BlockSpec((1, 8, LANES), lambda c, t: (c, 0, 0))

    return pl.pallas_call(
        _partial_sums_kernel,
        out_shape=jax.ShapeDtypeStruct((num_splits, 8, LANES), jnp.float32),
        grid_spec=pltpu.PrefetchScalarGridSpec(
            num_scalar_prefetch=0,
            grid=(num_splits, tiles_per_split),
            in_specs=[in_spec, in_spec],
            out_specs=out_spec,
            scratch_shapes=[
                pltpu.VMEM((tile_rows, LANES), jnp.float32),
                pltpu.VMEM((tile_rows, LANES), jnp.float32),
            ],
        ),
        compiler_params=pltpu.CompilerParams(
            dimension_semantics=("parallel", "arbitrary"),
            vmem_limit_bytes=32 * 1024 * 1024,
        ),
    )(inp2d, outp2d)


def custom_weighted_loss(inp, outp, fluence_weight=0.0):
    """inp, outp: (..., 2) arrays (last dim = polarization). Returns scalar loss."""
    assert inp.shape == outp.shape and inp.shape[-1] == 2
    n_per_pol = inp.size // 2

    partials = _partial_sums(inp, outp)            # (num_splits, 8, 128)
    abs_lanes = jnp.sum(partials[:, 0, :], axis=0)  # (128,)
    sq_lanes = jnp.sum(partials[:, 1, :], axis=0)   # (128,)

    # Row-major flattening of (..., 2): flat index parity == polarization,
    # and 128 is even, so lane parity == polarization.
    even = (jnp.arange(LANES) % 2) == 0
    abs1 = jnp.sum(jnp.where(even, abs_lanes, 0.0))
    abs2 = jnp.sum(jnp.where(even, 0.0, abs_lanes))
    sq1 = jnp.sum(jnp.where(even, sq_lanes, 0.0))
    sq2 = jnp.sum(jnp.where(even, 0.0, sq_lanes))

    pol1_mse = abs1 / n_per_pol
    pol2_mse = 10.0 * abs2 / n_per_pol              # |10a - 10b| = 10|a - b|
    pol1_fluence = jnp.abs(sq1) * CONVERSION_FACTOR
    pol2_fluence = 100.0 * jnp.abs(sq2) * CONVERSION_FACTOR
    return pol1_mse + pol2_mse + fluence_weight * jnp.sqrt(pol1_fluence + pol2_fluence)


def _reference_loss(inp, outp, fluence_weight):
    # Pure-JAX reference mirroring the PyTorch module exactly.
    a1, b1 = inp[..., 0], outp[..., 0]
    a2, b2 = 10.0 * inp[..., 1], 10.0 * outp[..., 1]
    fl = lambda x: jnp.sum(x ** 2) * CONVERSION_FACTOR
    pol1_mse = jnp.mean(jnp.abs(a1 - b1))
    pol2_mse = jnp.mean(jnp.abs(a2 - b2))
    pol1_fl = jnp.abs(fl(a1) - fl(b1))
    pol2_fl = jnp.abs(fl(a2) - fl(b2))
    return pol1_mse + pol2_mse + fluence_weight * jnp.sqrt(pol1_fl + pol2_fl)


if __name__ == "__main__":
    fluence_weight = 0.5

    # Small shapes consistent with the forward: (batch, samples, n_pol=2).
    B, S = 2, 256
    key = jax.random.PRNGKey(0)
    k1, k2 = jax.random.split(key)
    inp = jax.random.normal(k1, (B, S, 2), dtype=jnp.float32)
    outp = jax.random.normal(k2, (B, S, 2), dtype=jnp.float32)

    loss = custom_weighted_loss(inp, outp, fluence_weight)
    loss = jax.block_until_ready(loss)

    ref = _reference_loss(inp, outp, fluence_weight)
    assert jnp.allclose(loss, ref, rtol=1e-4, atol=1e-4), (loss, ref)

    print("KERNEL_OK")
</pallas_src>

<mosaic_0001>
module attributes {stable_mosaic.version = 11 : i64} {
  func.func @_partial_sums_kernel(%arg0: i32, %arg1: i32, %arg2: memref<8x128xf32, #tpu.memory_space<vmem>>, %arg3: memref<8x128xf32, #tpu.memory_space<vmem>>, %arg4: memref<1x8x128xf32, #tpu.memory_space<vmem>>, %arg5: memref<8x128xf32, #tpu.memory_space<vmem>>, %arg6: memref<8x128xf32, #tpu.memory_space<vmem>>) attributes {dimension_semantics = [#tpu.dimension_semantics<parallel>, #tpu.dimension_semantics<arbitrary>], iteration_bounds = array<i64: 1, 1>, scalar_prefetch = 0 : i64, scratch_operands = 2 : i64, tpu.core_type = #tpu.core_type<tc>, window_params = [{transform_indices = @transform_0, window_bounds = array<i64: 8, 128>}, {transform_indices = @transform_1, window_bounds = array<i64: 8, 128>}, {transform_indices = @transform_2, window_bounds = array<i64: 1, 8, 128>}]} {
    %c0_i32 = arith.constant 0 : i32
    %0 = arith.cmpi eq, %arg1, %c0_i32 : i32
    %1 = arith.extui %0 : i1 to i32
    %c0_i32_0 = arith.constant 0 : i32
    %2 = arith.cmpi ne, %1, %c0_i32_0 : i32
    scf.if %2 {
      %cst = arith.constant 0.000000e+00 : f32
      %19 = vector.broadcast %cst : f32 to vector<8x128xf32>
      %c0_14 = arith.constant 0 : index
      %c0_15 = arith.constant 0 : index
      %20 = vector.load %arg5[%c0_14, %c0_15] : memref<8x128xf32, #tpu.memory_space<vmem>>, vector<8x128xf32>
      tpu.vector_store %arg5[%c0_14, %c0_15], %19 {strides = array<i32>} : memref<8x128xf32, #tpu.memory_space<vmem>>, vector<8x128xf32>,
      %cst_16 = arith.constant 0.000000e+00 : f32
      %21 = vector.broadcast %cst_16 : f32 to vector<8x128xf32>
      %c0_17 = arith.constant 0 : index
      %c0_18 = arith.constant 0 : index
      %22 = vector.load %arg6[%c0_17, %c0_18] : memref<8x128xf32, #tpu.memory_space<vmem>>, vector<8x128xf32>
      tpu.vector_store %arg6[%c0_17, %c0_18], %21 {strides = array<i32>} : memref<8x128xf32, #tpu.memory_space<vmem>>, vector<8x128xf32>,
    } else {
    }
    %c0 = arith.constant 0 : index
    %c0_1 = arith.constant 0 : index
    %3 = vector.load %arg2[%c0, %c0_1] : memref<8x128xf32, #tpu.memory_space<vmem>>, vector<8x128xf32>
    %c0_2 = arith.constant 0 : index
    %c0_3 = arith.constant 0 : index
    %4 = vector.load %arg3[%c0_2, %c0_3] : memref<8x128xf32, #tpu.memory_space<vmem>>, vector<8x128xf32>
    %c0_4 = arith.constant 0 : index
    %c0_5 = arith.constant 0 : index
    %5 = vector.load %arg5[%c0_4, %c0_5] : memref<8x128xf32, #tpu.memory_space<vmem>>, vector<8x128xf32>
    %6 = arith.subf %3, %4 : vector<8x128xf32>
    %7 = math.absf %6 : vector<8x128xf32>
    %8 = arith.addf %5, %7 : vector<8x128xf32>
    %c0_6 = arith.constant 0 : index
    %c0_7 = arith.constant 0 : index
    %9 = vector.load %arg5[%c0_6, %c0_7] : memref<8x128xf32, #tpu.memory_space<vmem>>, vector<8x128xf32>
    tpu.vector_store %arg5[%c0_6, %c0_7], %8 {strides = array<i32>} : memref<8x128xf32, #tpu.memory_space<vmem>>, vector<8x128xf32>,
    %c0_8 = arith.constant 0 : index
    %c0_9 = arith.constant 0 : index
    %10 = vector.load %arg6[%c0_8, %c0_9] : memref<8x128xf32, #tpu.memory_space<vmem>>, vector<8x128xf32>
    %11 = arith.mulf %3, %3 : vector<8x128xf32>
    %12 = arith.mulf %4, %4 : vector<8x128xf32>
    %13 = arith.subf %11, %12 : vector<8x128xf32>
    %14 = arith.addf %10, %13 : vector<8x128xf32>
    %c0_10 = arith.constant 0 : index
    %c0_11 = arith.constant 0 : index
    %15 = vector.load %arg6[%c0_10, %c0_11] : memref<8x128xf32, #tpu.memory_space<vmem>>, vector<8x128xf32>
    tpu.vector_store %arg6[%c0_10, %c0_11], %14 {strides = array<i32>} : memref<8x128xf32, #tpu.memory_space<vmem>>, vector<8x128xf32>,
    %c0_i32_12 = arith.constant 0 : i32
    %16 = arith.cmpi eq, %arg1, %c0_i32_12 : i32
    %17 = arith.extui %16 : i1 to i32
    %c0_i32_13 = arith.constant 0 : i32
    %18 = arith.cmpi ne, %17, %c0_i32_13 : i32
    scf.if %18 {
      %c0_14 = arith.constant 0 : index
      %c0_15 = arith.constant 0 : index
      %19 = vector.load %arg5[%c0_14, %c0_15] : memref<8x128xf32, #tpu.memory_space<vmem>>, vector<8x128xf32>
      %cst = arith.constant dense<0.000000e+00> : vector<128xf32>
      %20 = vector.multi_reduction <add>, %19, %cst [0] : vector<8x128xf32> to vector<128xf32>
      %21 = vector.shape_cast %20 : vector<128xf32> to vector<1x128xf32>
      %c0_16 = arith.constant 0 : index
      %c0_17 = arith.constant 0 : index
      %22 = vector.load %arg6[%c0_16, %c0_17] : memref<8x128xf32, #tpu.memory_space<vmem>>, vector<8x128xf32>
      %cst_18 = arith.constant dense<0.000000e+00> : vector<128xf32>
      %23 = vector.multi_reduction <add>, %22, %cst_18 [0] : vector<8x128xf32> to vector<128xf32>
      %24 = vector.shape_cast %23 : vector<128xf32> to vector<1x128xf32>
      %25 = tpu.iota {dimensions = array<i32: 0>} : vector<8x128xi32>
      %c0_i32_19 = arith.constant 0 : i32
      %26 = vector.broadcast %c0_i32_19 : i32 to vector<8x128xi32>
      %27 = arith.cmpi eq, %25, %26 : vector<8x128xi32>
      %c1_i32 = arith.constant 1 : i32
      %28 = vector.broadcast %c1_i32 : i32 to vector<8x128xi32>
      %29 = arith.cmpi eq, %25, %28 : vector<8x128xi32>
      %cst_20 = arith.constant 0.000000e+00 : f32
      %30 = vector.shape_cast %24 : vector<1x128xf32> to vector<1x128xf32>
      %31 = vector.broadcast %30 : vector<1x128xf32> to vector<8x128xf32>
      %32 = vector.broadcast %cst_20 : f32 to vector<8x128xf32>
      %33 = arith.select %29, %31, %32 : vector<8x128xi1>, vector<8x128xf32>
      %34 = vector.shape_cast %21 : vector<1x128xf32> to vector<1x128xf32>
      %35 = vector.broadcast %34 : vector<1x128xf32> to vector<8x128xf32>
      %36 = arith.select %27, %35, %33 : vector<8x128xi1>, vector<8x128xf32>
      %c0_21 = arith.constant 0 : index
      %c0_22 = arith.constant 0 : index
      %c0_23 = arith.constant 0 : index
      %37 = vector.load %arg4[%c0_21, %c0_22, %c0_23] : memref<1x8x128xf32, #tpu.memory_space<vmem>>, vector<1x8x128xf32>
      %38 = vector.shape_cast %37 : vector<1x8x128xf32> to vector<8x128xf32>
      %39 = vector.shape_cast %36 : vector<8x128xf32> to vector<1x8x128xf32>
      tpu.vector_store %arg4[%c0_21, %c0_22, %c0_23], %39 {strides = array<i32>} : memref<1x8x128xf32, #tpu.memory_space<vmem>>, vector<1x8x128xf32>,
    } else {
    }
    return
  }
  func.func @transform_0(%arg0: i32, %arg1: i32) -> (i32, i32) {
    %c1_i32 = arith.constant 1 : i32
    %0 = arith.muli %arg0, %c1_i32 : i32
    %1 = arith.addi %0, %arg1 : i32
    %c0_i32 = arith.constant 0 : i32
    %c0_i32_0 = arith.constant 0 : i32
    return %1, %c0_i32 : i32, i32
  }
  func.func @transform_1(%arg0: i32, %arg1: i32) -> (i32, i32) {
    %c1_i32 = arith.constant 1 : i32
    %0 = arith.muli %arg0, %c1_i32 : i32
    %1 = arith.addi %0, %arg1 : i32
    %c0_i32 = arith.constant 0 : i32
    %c0_i32_0 = arith.constant 0 : i32
    return %1, %c0_i32 : i32, i32
  }
  func.func @transform_2(%arg0: i32, %arg1: i32) -> (i32, i32, i32) {
    %c0_i32 = arith.constant 0 : i32
    %c0_i32_0 = arith.constant 0 : i32
    %c0_i32_1 = arith.constant 0 : i32
    return %arg0, %c0_i32, %c0_i32_0 : i32, i32, i32
  }
}

</mosaic_0001>

<bundles_post_ra>
// kernel: tpu_custom_call.1
= control target key start
LH: loop header
LB: loop body
LE: loop exit
PB: predicated region body
PF: predicated region fallthrough
CT: control target
= control target key end

     0   :  { %7 = vsyncpa [#allocation5], 0  ;;  %s217_s0 = inlined_call_operand.hbm [shape: f32[8,128], index: 0, kind: input, shape index: {}]   ;;  %s218_s1 = inlined_call_operand.hbm [shape: f32[8,128], index: 1, kind: input, shape index: {}]   ;;  %s219_s2 = inlined_call_operand.hbm [shape: f32[1,8,128], index: 2, kind: output, shape index: {}]  }
   0x1   :  { %8 = vsyncpa [#allocation8], 0 }
   0x2   :  { %9 = vsyncpa [#allocation6], 0  ;;  %s18_s11 = sshll.u32 %s217_s0, 4  ;;  %s190_s12 = smov [#allocation4]   ;;  %s19_s11 = int_to_ptr.hbm [resolvable:$true] %s18_s11 }
   0x3   :  { %s20_s13 = sshll.u32 %s190_s12, 4  ;;  %s32_s16 = sshll.u32 %s218_s1, 4  ;;  %s21_s13 = int_to_ptr.vmem [resolvable:$true] %s20_s13  ;;  %s33_s16 = int_to_ptr.hbm [resolvable:$true] %s32_s16 }
   0x4   :  { %23 = dma.hbm_to_vmem [thread:$0]  %s19_s11, 128, %s21_s13, [#allocation5]  }
   0x5   :  { %s191_s17 = smov [#allocation7]  }
   0x6   :  { %s34_s18 = sshll.u32 %s191_s17, 4  ;;  %s35_s18 = int_to_ptr.vmem [resolvable:$true] %s34_s18 }
   0x7   :  { %37 = dma.hbm_to_vmem [thread:$0]  %s33_s16, 128, %s35_s18, [#allocation8]  }
   0x8   :  { %184 = dma.done.wait [#allocation5], 128  }
   0x9   :  { %185 = vsyncadd [#allocation5], 4294967168 }
   0xa   :  { %186 = dma.done.wait [#allocation8], 128  }
   0xb   :  { %187 = vsyncadd [#allocation8], 4294967168  ;;  %v54_v0 = vld [vmem:[#allocation4] sm:$0xff]  ;;  %v55_v1 = vld [vmem:[#allocation7] sm:$0xff]  ;;  %v84_v9 = vlaneseq  ;;  %s192_s0 = smov [#allocation9]   ;;  %s98_s21 = sshll.u32 %s219_s2, 4  ;;  %s99_s21 = int_to_ptr.hbm [resolvable:$true] %s98_s21 }
   0xc   :  { %v57_v2 = vsub.f32 %v54_v0, %v55_v1  ;;  %v62_v3 = vmul.f32 %v54_v0, %v54_v0  ;;  %v63_v4 = vmul.f32 %v55_v1, %v55_v1  ;;  %s96_s1 = sshll.u32 %s192_s0, 4  ;;  %s97_s1 = int_to_ptr.vmem [resolvable:$true] %s96_s1 }
   0xd   :  { %v85_v14 = vshrl.u32 %v84_v9, 7 }
   0xe   :  { %v58_v5 = vand.u32 2147483647, %v57_v2  ;;  %v64_v6 = vsub.f32 %v62_v3, %v63_v4 }
   0xf   :  { %vm87_vm0 = vcmp.eq.s32.totalorder %v85_v14, 1  ;;  %vm86_vm1 = vcmp.eq.s32.totalorder %v85_v14, 0 }
  0x10   :  { %v71_v7 = vrot.slane %v58_v5, 4  ;;  %v78_v8 = vrot.slane %v64_v6, 4 }
  0x12   :  { %v72_v10 = vadd.f32 %v71_v7, %v58_v5  ;;  %v79_v11 = vadd.f32 %v78_v8, %v64_v6 }
  0x14   :  { %v73_v12 = vrot.slane %v72_v10, 2  ;;  %v80_v13 = vrot.slane %v79_v11, 2 }
  0x16   :  { %v74_v15 = vadd.f32 %v73_v12, %v72_v10  ;;  %v81_v16 = vadd.f32 %v80_v13, %v79_v11 }
  0x18   :  { %v75_v17 = vrot.slane %v74_v15, 1  ;;  %v82_v18 = vrot.slane %v81_v16, 1 }
  0x1a   :  { %v76_v19 = vadd.f32 %v75_v17, %v74_v15  ;;  %v83_v20 = vadd.f32 %v82_v18, %v81_v16 }
  0x1c   :  { %v88_v21 = vsel %vm87_vm0, %v83_v20, 0.0 }
  0x1d   :  { %v89_v22 = vsel %vm86_vm1, %v76_v19, %v88_v21 }
  0x1e   :  { %90 = vst [vmem:[#allocation9] sm:$0xff] %v89_v22 }
  0x1f   :  { %101 = dma.vmem_to_hbm [thread:$0]  %s97_s1, 128, %s99_s21, [#allocation6]  }
  0x20   :  { %188 = dma.done.wait [#allocation6], 128  }
  0x21   :  { %189 = vsyncadd [#allocation6], 4294967168 }
  0x22   :  { %106 = vsyncpa [#allocation5], 1 }
  0x23   :  { %107 = vsyncpa [#allocation8], 1 }
  0x24   :  { %108 = vsyncpa [#allocation6], 1 }

</bundles_post_ra>
